<compile_context>
chip_gen: v7x
topology: tpu7x:2x2x1
jax: 0.10.0
libtpu: 0.0.40
codegen_flags: <defaults>
</compile_context>

<pallas_src>
import functools

import jax
import jax.numpy as jnp
from jax.experimental import pallas as pl
from jax.experimental.pallas import tpu as pltpu

MARGIN = 2.0
EPS = 1e-6  # F.pairwise_distance default eps


def _round_up(x, m):
    return ((x + m - 1) // m) * m


def _contrastive_loss_kernel(o1_ref, o2_ref, label_ref, out_ref, *,
                             d_real, b_real, tb, margin,
                             need_lane_mask, need_row_mask):
    i = pl.program_id(0)

    o1 = o1_ref[...].astype(jnp.float32)            # (TB, Dp)
    o2 = o2_ref[...].astype(jnp.float32)            # (TB, Dp)
    label = label_ref[...].astype(jnp.float32)      # (TB, 1)

    # F.pairwise_distance: ||x1 - x2 + eps||_2 along the feature axis.
    diff = o1 - o2
    if need_lane_mask:
        # Add eps only on the real feature lanes so zero-padded lanes stay 0.
        lane = jax.lax.broadcasted_iota(jnp.int32, diff.shape, 1)
        diff = jnp.where(lane < d_real, diff + EPS, 0.0)
    else:
        diff = diff + EPS

    d2 = jnp.sum(diff * diff, axis=-1, keepdims=True)    # (TB, 1)
    d = jnp.sqrt(d2)                                      # (TB, 1)

    # Positive term uses d2 directly (== pow(sqrt(x), 2) to within 1 ulp).
    pos = (1.0 - label) * d2
    neg = label * jnp.square(jnp.maximum(margin - d, 0.0))
    per_row = pos + neg                                   # (TB, 1)

    if need_row_mask:
        # Zero the contribution of batch-padding rows.
        row = jax.lax.broadcasted_iota(jnp.int32, per_row.shape, 0) + i * tb
        per_row = jnp.where(row < b_real, per_row, 0.0)

    @pl.when(i == 0)
    def _():
        out_ref[...] = jnp.zeros_like(out_ref)

    out_ref[...] += jnp.sum(per_row, keepdims=True)       # (1, 1)

    @pl.when(i == pl.num_programs(0) - 1)
    def _():
        out_ref[...] = out_ref[...] / float(b_real)       # mean over TOTAL batch


def contrastive_loss(output1, output2, label, margin=MARGIN):
    """output1, output2: (B, D); label: (B,) or (B, 1). Returns scalar f32 loss."""
    B, D = output1.shape
    label2d = label.reshape(B, 1)

    # Lane-dense feature axis.
    D_pad = max(128, _round_up(D, 128))

    # Row-tile sizing: keep 2 inputs x 2 pipeline buffers <= ~12 MiB so the
    # default scoped VMEM budget is safe on v5e / v6e / v7x.
    itemsize = max(jnp.dtype(output1.dtype).itemsize,
                   jnp.dtype(output2.dtype).itemsize)
    input_budget = 12 * 1024 * 1024
    tb = input_budget // (4 * D_pad * itemsize)
    tb = int(max(8, min(tb, 1024, _round_up(B, 8))))
    tb = (tb // 8) * 8

    B_pad = _round_up(B, tb)
    grid = B_pad // tb

    def _pad2d(x, rows, cols):
        if x.shape == (rows, cols):
            return x
        return jnp.pad(x, ((0, rows - x.shape[0]), (0, cols - x.shape[1])))

    # Keep native dtypes; cast happens inside the kernel.
    o1p = _pad2d(output1, B_pad, D_pad)
    o2p = _pad2d(output2, B_pad, D_pad)
    lblp = _pad2d(label2d, B_pad, 1)

    kernel = functools.partial(
        _contrastive_loss_kernel,
        d_real=D, b_real=B, tb=tb, margin=float(margin),
        need_lane_mask=(D_pad != D), need_row_mask=(B_pad != B))

    out = pl.pallas_call(
        kernel,
        out_shape=jax.ShapeDtypeStruct((1, 1), jnp.float32),
        grid_spec=pltpu.PrefetchScalarGridSpec(
            num_scalar_prefetch=0,
            grid=(grid,),
            in_specs=[
                pl.BlockSpec((tb, D_pad), lambda i: (i, 0)),
                pl.BlockSpec((tb, D_pad), lambda i: (i, 0)),
                pl.BlockSpec((tb, 1), lambda i: (i, 0)),
            ],
            out_specs=pl.BlockSpec((1, 1), lambda i: (0, 0)),
        ),
        compiler_params=pltpu.CompilerParams(
            dimension_semantics=("arbitrary",),   # resident accumulator output
            vmem_limit_bytes=32 * 1024 * 1024,
        ),
    )(o1p, o2p, lblp)
    return out[0, 0]


def _reference_loss(o1, o2, label, margin=MARGIN):
    # Pure-JAX reference mirroring the PyTorch semantics.
    d = jnp.sqrt(jnp.sum((o1.astype(jnp.float32) - o2.astype(jnp.float32) + EPS) ** 2,
                         axis=1))
    lbl = label.reshape(-1).astype(jnp.float32)
    hinge = jnp.maximum(margin - d, 0.0)
    return jnp.mean((1.0 - lbl) * d**2 + lbl * hinge**2)


if __name__ == "__main__":
    key = jax.random.PRNGKey(0)
    k1, k2, k3 = jax.random.split(key, 3)

    B, D = 8, 32
    output1 = jax.random.normal(k1, (B, D), dtype=jnp.float32)
    output2 = jax.random.normal(k2, (B, D), dtype=jnp.float32)
    label = jax.random.bernoulli(k3, 0.5, (B,)).astype(jnp.float32)

    loss = jax.block_until_ready(contrastive_loss(output1, output2, label))
    ref = jax.block_until_ready(_reference_loss(output1, output2, label))

    assert jnp.allclose(loss, ref, rtol=1e-5, atol=1e-5), (loss, ref)
    print("KERNEL_OK")
</pallas_src>

<mosaic_0001>
module attributes {stable_mosaic.version = 11 : i64} {
  func.func @_contrastive_loss_kernel(%arg0: i32, %arg1: memref<8x128xf32, #tpu.memory_space<vmem>>, %arg2: memref<8x128xf32, #tpu.memory_space<vmem>>, %arg3: memref<8x1xf32, #tpu.memory_space<vmem>>, %arg4: memref<1x1xf32, #tpu.memory_space<vmem>>) attributes {dimension_semantics = [#tpu.dimension_semantics<arbitrary>], iteration_bounds = array<i64: 1>, scalar_prefetch = 0 : i64, scratch_operands = 0 : i64, tpu.core_type = #tpu.core_type<tc>, window_params = [{transform_indices = @transform_0, window_bounds = array<i64: 8, 128>}, {transform_indices = @transform_1, window_bounds = array<i64: 8, 128>}, {transform_indices = @transform_2, window_bounds = array<i64: 8, 1>}, {pipeline_mode = #tpu.pipeline_mode<synchronous>, transform_indices = @transform_3, window_bounds = array<i64: 1, 1>}]} {
    %c0 = arith.constant 0 : index
    %c0_0 = arith.constant 0 : index
    %0 = vector.load %arg1[%c0, %c0_0] : memref<8x128xf32, #tpu.memory_space<vmem>>, vector<8x128xf32>
    %c0_1 = arith.constant 0 : index
    %c0_2 = arith.constant 0 : index
    %1 = vector.load %arg2[%c0_1, %c0_2] : memref<8x128xf32, #tpu.memory_space<vmem>>, vector<8x128xf32>
    %c0_3 = arith.constant 0 : index
    %c0_4 = arith.constant 0 : index
    %2 = vector.load %arg3[%c0_3, %c0_4] : memref<8x1xf32, #tpu.memory_space<vmem>>, vector<8x1xf32>
    %3 = arith.subf %0, %1 : vector<8x128xf32>
    %4 = tpu.iota {dimensions = array<i32: 1>} : vector<8x128xi32>
    %c32_i32 = arith.constant 32 : i32
    %5 = vector.broadcast %c32_i32 : i32 to vector<8x128xi32>
    %6 = arith.cmpi slt, %4, %5 : vector<8x128xi32>
    %cst = arith.constant 9.99999997E-7 : f32
    %7 = vector.broadcast %cst : f32 to vector<8x128xf32>
    %8 = arith.addf %3, %7 : vector<8x128xf32>
    %cst_5 = arith.constant 0.000000e+00 : f32
    %9 = vector.broadcast %cst_5 : f32 to vector<8x128xf32>
    %10 = arith.select %6, %8, %9 : vector<8x128xi1>, vector<8x128xf32>
    %11 = arith.mulf %10, %10 : vector<8x128xf32>
    %cst_6 = arith.constant dense<0.000000e+00> : vector<8xf32>
    %12 = vector.multi_reduction <add>, %11, %cst_6 [1] : vector<8x128xf32> to vector<8xf32>
    %13 = vector.shape_cast %12 : vector<8xf32> to vector<8x1xf32>
    %14 = math.sqrt %13 : vector<8x1xf32>
    %cst_7 = arith.constant 1.000000e+00 : f32
    %15 = vector.broadcast %cst_7 : f32 to vector<8x1xf32>
    %16 = arith.subf %15, %2 : vector<8x1xf32>
    %17 = arith.mulf %16, %13 : vector<8x1xf32>
    %cst_8 = arith.constant 2.000000e+00 : f32
    %18 = vector.broadcast %cst_8 : f32 to vector<8x1xf32>
    %19 = arith.subf %18, %14 : vector<8x1xf32>
    %cst_9 = arith.constant 0.000000e+00 : f32
    %20 = vector.broadcast %cst_9 : f32 to vector<8x1xf32>
    %21 = arith.maximumf %19, %20 : vector<8x1xf32>
    %22 = arith.mulf %21, %21 : vector<8x1xf32>
    %23 = arith.mulf %2, %22 : vector<8x1xf32>
    %24 = arith.addf %17, %23 : vector<8x1xf32>
    %c0_i32 = arith.constant 0 : i32
    %25 = arith.cmpi eq, %arg0, %c0_i32 : i32
    %26 = arith.extui %25 : i1 to i32
    %c0_i32_10 = arith.constant 0 : i32
    %27 = arith.cmpi ne, %26, %c0_i32_10 : i32
    scf.if %27 {
      %cst_18 = arith.constant 0.000000e+00 : f32
      %39 = vector.broadcast %cst_18 : f32 to vector<1x1xf32>
      %c0_19 = arith.constant 0 : index
      %c0_20 = arith.constant 0 : index
      %40 = vector.load %arg4[%c0_19, %c0_20] : memref<1x1xf32, #tpu.memory_space<vmem>>, vector<1x1xf32>
      tpu.vector_store %arg4[%c0_19, %c0_20], %39 {strides = array<i32>} : memref<1x1xf32, #tpu.memory_space<vmem>>, vector<1x1xf32>,
    } else {
    }
    %c0_11 = arith.constant 0 : index
    %c0_12 = arith.constant 0 : index
    %28 = vector.load %arg4[%c0_11, %c0_12] : memref<1x1xf32, #tpu.memory_space<vmem>>, vector<1x1xf32>
    %29 = vector.shape_cast %24 : vector<8x1xf32> to vector<1x8x1xf32>
    %cst_13 = arith.constant dense<0.000000e+00> : vector<1xf32>
    %30 = vector.multi_reduction <add>, %29, %cst_13 [1, 2] : vector<1x8x1xf32> to vector<1xf32>
    %31 = vector.shape_cast %30 : vector<1xf32> to vector<1x1x1xf32>
    %32 = vector.extract %31[0, 0, 0] : f32 from vector<1x1x1xf32>
    %33 = vector.broadcast %32 : f32 to vector<1x1xf32>
    %34 = arith.addf %28, %33 : vector<1x1xf32>
    %c0_14 = arith.constant 0 : index
    %c0_15 = arith.constant 0 : index
    %35 = vector.load %arg4[%c0_14, %c0_15] : memref<1x1xf32, #tpu.memory_space<vmem>>, vector<1x1xf32>
    tpu.vector_store %arg4[%c0_14, %c0_15], %34 {strides = array<i32>} : memref<1x1xf32, #tpu.memory_space<vmem>>, vector<1x1xf32>,
    %c0_i32_16 = arith.constant 0 : i32
    %36 = arith.cmpi eq, %arg0, %c0_i32_16 : i32
    %37 = arith.extui %36 : i1 to i32
    %c0_i32_17 = arith.constant 0 : i32
    %38 = arith.cmpi ne, %37, %c0_i32_17 : i32
    scf.if %38 {
      %c0_18 = arith.constant 0 : index
      %c0_19 = arith.constant 0 : index
      %39 = vector.load %arg4[%c0_18, %c0_19] : memref<1x1xf32, #tpu.memory_space<vmem>>, vector<1x1xf32>
      %cst_20 = arith.constant 8.000000e+00 : f32
      %40 = vector.broadcast %cst_20 : f32 to vector<1x1xf32>
      %41 = arith.divf %39, %40 : vector<1x1xf32>
      %c0_21 = arith.constant 0 : index
      %c0_22 = arith.constant 0 : index
      %42 = vector.load %arg4[%c0_21, %c0_22] : memref<1x1xf32, #tpu.memory_space<vmem>>, vector<1x1xf32>
      tpu.vector_store %arg4[%c0_21, %c0_22], %41 {strides = array<i32>} : memref<1x1xf32, #tpu.memory_space<vmem>>, vector<1x1xf32>,
    } else {
    }
    return
  }
  func.func @transform_0(%arg0: i32) -> (i32, i32) {
    %c0_i32 = arith.constant 0 : i32
    %c0_i32_0 = arith.constant 0 : i32
    return %arg0, %c0_i32 : i32, i32
  }
  func.func @transform_1(%arg0: i32) -> (i32, i32) {
    %c0_i32 = arith.constant 0 : i32
    %c0_i32_0 = arith.constant 0 : i32
    return %arg0, %c0_i32 : i32, i32
  }
  func.func @transform_2(%arg0: i32) -> (i32, i32) {
    %c0_i32 = arith.constant 0 : i32
    %c0_i32_0 = arith.constant 0 : i32
    return %arg0, %c0_i32 : i32, i32
  }
  func.func @transform_3(%arg0: i32) -> (i32, i32) {
    %c0_i32 = arith.constant 0 : i32
    %c0_i32_0 = arith.constant 0 : i32
    %c0_i32_1 = arith.constant 0 : i32
    return %c0_i32, %c0_i32_0 : i32, i32
  }
}

</mosaic_0001>

<bundles_post_ra>
// kernel: tpu_custom_call.1
= control target key start
LH: loop header
LB: loop body
LE: loop exit
PB: predicated region body
PF: predicated region fallthrough
CT: control target
= control target key end

     0   :  { %8 = vsyncpa [#allocation3], 0  ;;  %s208_s0 = inlined_call_operand.vmem [shape: f32[8,128], index: 0, kind: input, shape index: {}]   ;;  %s209_s1 = inlined_call_operand.hbm [shape: f32[8,128], index: 1, kind: input, shape index: {}]   ;;  %s210_s2 = inlined_call_operand.vmem [shape: f32[8,1], index: 2, kind: input, shape index: {}]   ;;  %s211_s3 = inlined_call_operand.hbm [shape: f32[1,1], index: 3, kind: output, shape index: {}]  }
   0x1   :  { %9 = vsyncpa [#allocation4], 0  ;;  %s152_s12 = smov [#allocation2]   ;;  %s104_s16 = scalar_lea.hbm %s209_s1, 128 }
   0x2   :  { %s18_s13 = sshll.u32 %s152_s12, 4  ;;  %p105_p0 = scmp.ne.s32.totalorder %s209_s1, %s104_s16  ;;  %s19_s13 = int_to_ptr.vmem [resolvable:$true] %s18_s13 }
   0x3   :  { %p108_p1 = scmp.lt.u32.totalorder %s104_s16, %s209_s1 }
   0x5   :  { %p110_p2 = pnand %p108_p1, %p105_p0 }
   0x7   :  { %113 = shalt.err (!%p110_p2)
}
   0x8   :  { %s114_s21 = scalar_lea.vmem %s19_s13, 128  ;;  %p119_p4 = scmp.lt.s32.totalorder %s19_s13, %s19_s13 }
   0x9   :  { %p115_p3 = scmp.ne.s32.totalorder %s19_s13, %s114_s21  ;;  %p120_p5 = scmp.lt.s32.totalorder %s114_s21, %s114_s21 }
   0xb   :  { %p121_p6 = por %p120_p5, %p119_p4 }
   0xd   :  { %p122_p7 = pnand %p121_p6, %p115_p3 }
   0xf   :  { %125 = shalt.err (!%p122_p7)
}
  0x10   :  { %21 = dma.hbm_to_vmem [thread:$0]  %s209_s1, 128, %s19_s13, [#allocation3]  }
  0x11   :  { %148 = dma.done.wait [#allocation3], 128  }
  0x12   :  { %149 = vsyncadd [#allocation3], 4294967168  ;;  %v31_v0 = vlaneseq  ;;  %v27_v2 = vld [vmem:[%s208_s0] sm:$0xff]  ;;  %vm60_vm3 = vcmask 7168   ;;  %vm57_vm4 = vcmask 0   ;;  %v153_v23 = vmov 0.0  }
  0x13   :  { %v28_v3 = vld [vmem:[#allocation2] sm:$0xff]  ;;  %58 = vst.msk [vmem:[#allocation5] sm:$0x1] %vm57_vm4, %v153_v23 }
  0x14   :  { %v32_v1 = vand.u32 127, %v31_v0  ;;  %v30_v4 = vsub.f32 %v27_v2, %v28_v3  ;;  %v29_v13 = vld [vmem:[%s210_s2] sm:$0xff]  ;;  %s154_s2 = smov [#allocation5]  }
  0x15   :  { %v46_v16 = vsub.f32 1.0, %v29_v13  ;;  %s88_s27 = sshll.u32 %s154_s2, 4  ;;  %s89_s27 = int_to_ptr.vmem [resolvable:$true] %s88_s27 }
  0x16   :  { %vm33_vm0 = vcmp.lt.s32.totalorder %v32_v1, 32  ;;  %v34_v5 = vadd.f32 1e-06, %v30_v4  ;;  %s126_s28 = scalar_lea.vmem %s89_s27, 16  ;;  %s130_s29 = scalar_lea.vmem %s89_s27, 32 }
  0x17   :  { %p127_p8 = scmp.ne.s32.totalorder %s89_s27, %s126_s28  ;;  %p131_p9 = scmp.lt.s32.totalorder %s89_s27, %s89_s27 }
  0x18   :  { %v35_v6 = vsel %vm33_vm0, %v34_v5, 0.0  ;;  %p132_p10 = scmp.lt.s32.totalorder %s130_s29, %s126_s28 }
  0x19   :  { %v36_v7 = vmul.f32 %v35_v6, %v35_v6 }
  0x1a   :  { %v59_v31 = vld [vmem:[#allocation5] sm:$0x1]  ;;  %p133_p11 = por %p132_p10, %p131_p9 }
  0x1b   :  { %37 = vadd.xlane.f32.xlu0 %v36_v7 }
  0x1c   :  { %p134_p12 = pnand %p133_p11, %p127_p8 }
  0xa8   :  { %v38_v8 = vpop.xlane.xlu0 %37 }
  0xa9   :  { %102 = vrsqrt.f32 %v38_v8  ;;  %vm41_vm1 = vcmp.eq.f32.partialorder %v38_v8, inf  ;;  %v44_v11 = vand.u32 2147483648, %v38_v8  ;;  %vm43_vm2 = vcmp.eq.f32.partialorder %v38_v8, 0.0 }
  0xaa   :  { %v47_v19 = vmul.f32 %v46_v16, %v38_v8 }
  0xb3   :  { %v103_v9 = vpop.eup %102 }
  0xb4   :  { %v40_v10 = vmul.f32 %v103_v9, %v38_v8 }
  0xb6   :  { %v42_v12 = vsel %vm41_vm1, %v38_v8, %v40_v10 }
  0xb7   :  { %v45_v14 = vsel %vm43_vm2, %v44_v11, %v42_v12 }
  0xb8   :  { %v48_v15 = vsub.f32 2.0, %v45_v14 }
  0xba   :  { %v49_v17 = vmax.f32 %v48_v15, 0.0 }
  0xbc   :  { %v50_v18 = vmul.f32 %v49_v17, %v49_v17 }
  0xbe   :  { %v51_v20 = vmul.f32 %v50_v18, %v29_v13 }
  0xc0   :  { %v52_v21 = vadd.f32 %v51_v20, %v47_v19 }
  0xc2   :  { %v61_v22 = vsel %vm60_vm3, %v52_v21, 0.0 }
  0xc3   :  { %62 = vadd.xlane.f32.xlu0 %v61_v22 }
 0x150   :  { %v63_v24 = vpop.xlane.xlu0 %62 }
 0x151   :  { %v64_v25 = vrot.slane %v63_v24, 4 }
 0x153   :  { %v65_v26 = vadd.f32 %v64_v25, %v63_v24 }
 0x155   :  { %v66_v27 = vrot.slane %v65_v26, 2 }
 0x157   :  { %v67_v28 = vadd.f32 %v66_v27, %v65_v26 }
 0x159   :  { %v68_v29 = vrot.slane %v67_v28, 1 }
 0x15b   :  { %v69_v30 = vadd.f32 %v68_v29, %v67_v28 }
 0x15d   :  { %97 = vpush %v69_v30 }
 0x18e   :  { %s98_s0 = spop %97 }
 0x18f   :  { %v71_v32 = vstv %s98_s0 }
 0x190   :  { %v72_v33 = vadd.f32 %v71_v32, %v59_v31 }
 0x192   :  { %74 = vst.msk [vmem:[#allocation5] sm:$0x1] %vm57_vm4, %v72_v33 }
 0x199   :  { %v78_v34 = vld [vmem:[#allocation5] sm:$0x1] }
 0x19a   :  { %v80_v35 = vmul.f32 0.125, %v78_v34 }
 0x19c   :  { %81 = vst.msk [vmem:[#allocation5] sm:$0x1] %vm57_vm4, %v80_v35 }
 0x19d   :  { %137 = shalt.err (!%p134_p12)
}
 0x19e   :  { %s138_s5 = scalar_lea.hbm %s211_s3, 16 }
 0x19f   :  { %p139_p13 = scmp.ne.s32.totalorder %s211_s3, %s138_s5  ;;  %p142_p0 = scmp.lt.u32.totalorder %s138_s5, %s211_s3 }
 0x1a1   :  { %p144_p1 = pnand %p142_p0, %p139_p13 }
 0x1a3   :  { %147 = shalt.err (!%p144_p1)
}
 0x1a4   :  { %91 = dma.vmem_to_hbm [thread:$0]  %s89_s27, 16, %s211_s3, [#allocation4]  }
 0x1a5   :  { %150 = dma.done.wait [#allocation4], 16  }
 0x1a6   :  { %151 = vsyncadd [#allocation4], 4294967280 }
 0x1a7   :  { %95 = vsyncpa [#allocation3], 1 }
 0x1a8   :  { %96 = vsyncpa [#allocation4], 1 }

</bundles_post_ra>
